<compile_context>
chip_gen: v5e
topology: v5e:2x2
jax: 0.10.0
libtpu: 0.0.40
codegen_flags: <defaults>
</compile_context>

<pallas_src>
import math
import numpy as np

import jax
import jax.numpy as jnp
from jax import lax
from jax.experimental import pallas as pl
from jax.experimental.pallas import tpu as pltpu

LANES = 128
MAX_TILE_ROWS = 2048                   # 2048x128 f32 tile = 1 MiB (>=85% HBM roofline)
FAST_PATH_MAX_F32_BYTES = 2 << 20      # whole-slab VMEM-resident fast-path threshold
FAST_VMEM_LIMIT = 40 << 20             # fits physical VMEM on v5e/v6e (128M) and v7x (64M)
TILED_VMEM_LIMIT = 32 << 20

_TANH_METHODS = ('SAT-originalW', 'SAT-modifiedW')


# ----------------------------------------------------------------------------
# layout helpers (static, trace-time)
# ----------------------------------------------------------------------------
def _cdiv(a, b):
    return -(-a // b)


def _round_up(a, b):
    return _cdiv(a, b) * b


def _sublane_multiple(dtype):
    # f32 -> 8, bf16 -> 16, int8/fp8 -> 32  (native packed-sublane granularity)
    return max(8, 32 // np.dtype(dtype).itemsize)


def _layout(n, dtype, max_tile_rows):
    """Minimal slab rows, balanced-tile rows, tile rows, num tiles."""
    sub = _sublane_multiple(dtype)
    rows_min = _round_up(_cdiv(n, LANES), sub)
    num_tiles = _cdiv(rows_min, max_tile_rows)
    # Balance tile size so padding waste is < num_tiles*sub rows (never a full
    # extra tile) while every block stays full-size (no OOB blocks).
    tr = _round_up(_cdiv(rows_min, num_tiles), sub)
    rows = tr * num_tiles
    return rows_min, rows, tr, num_tiles


def _to_slab(flat, rows):
    n = flat.shape[0]
    pad = rows * LANES - n
    if pad:                                  # static check: skip pad copy when possible
        flat = jnp.pad(flat, (0, pad))
    return flat.reshape(rows, LANES)


# ----------------------------------------------------------------------------
# elementwise quantization (shared by all kernels)
# ----------------------------------------------------------------------------
def _uses_tanh(method, bits):
    return method in _TANH_METHODS or (method in ('Yu21', 'Sun21') and bits != 1)


def _quantize_block(xf, method, bits, *, inv_max_tanh=None, mean_abs=None, sf=None):
    """Forward quantization of an f32 block (no std scaling)."""
    if _uses_tanh(method, bits):
        y = jnp.tanh(xf) * inv_max_tanh           # strength-reduced divide
        y = (y + 1.0) * 0.5
        if method == 'SAT-modifiedW':
            eh = float(1 << bits)
            y = jnp.minimum(jnp.floor(eh * y), eh - 1.0) * (1.0 / eh)
        else:
            ei = float((1 << bits) - 1)
            y = jnp.round(ei * y) * (1.0 / ei)    # round-half-even == torch.round
        y = y * 2.0 - 1.0
        if method == 'Yu21':
            y = y * mean_abs                      # mean(|x|)
        return y
    if method in ('Yu21', 'Sun21') and bits == 1:
        # mean|x| > 0  =>  sign(x / mean|x|) == sign(x)
        return jnp.sign(xf) * mean_abs
    if method == 'LSQ':
        n_clip = -(2.0 ** (bits - 1.0))
        p_clip = 2.0 ** (bits - 1.0) - 1.0
        # exact divide kept: LSQ is HBM-bound (EUP otherwise idle), bit-exact
        y = xf / (sf + 1e-6)
        y = jnp.clip(y, n_clip, p_clip)           # F.hardtanh(y, n, p)
        y = jnp.round(y)
        return y * sf
    return xf


# ----------------------------------------------------------------------------
# kernels
# ----------------------------------------------------------------------------
def _make_fast_kernel(method, bits, n_valid, rows, scale, out_features):
    """Whole-slab VMEM-resident kernel: one HBM read of x, one HBM write of y."""
    inv_n = 1.0 / float(n_valid)
    pad = rows * LANES - n_valid

    def kernel(params_ref, x_ref, y_ref):
        xf = x_ref[...].astype(jnp.float32)
        kw = {}
        if _uses_tanh(method, bits):
            ax = jnp.abs(xf)                      # zero padding is harmless for |x| stats
            maxabs = jnp.max(ax, axis=(0, 1), keepdims=True)
            # tanh monotone & odd => max|tanh(x)| == tanh(max|x|)
            kw['inv_max_tanh'] = 1.0 / jnp.tanh(maxabs)
            if method == 'Yu21':
                kw['mean_abs'] = jnp.sum(ax, axis=(0, 1), keepdims=True) * inv_n
        elif method in ('Yu21', 'Sun21') and bits == 1:
            kw['mean_abs'] = jnp.sum(jnp.abs(xf), axis=(0, 1), keepdims=True) * inv_n
        elif method == 'LSQ':
            kw['sf'] = params_ref[0]

        y = _quantize_block(xf, method, bits, **kw)

        if scale and method in _TANH_METHODS:
            if pad:                               # mask padding out of the y stats only
                fid = (lax.broadcasted_iota(jnp.int32, (rows, LANES), 0) * LANES
                       + lax.broadcasted_iota(jnp.int32, (rows, LANES), 1))
                ym = jnp.where(fid < n_valid, y, 0.0)
            else:
                ym = y
            sy = jnp.sum(ym, axis=(0, 1), keepdims=True)
            sy2 = jnp.sum(ym * ym, axis=(0, 1), keepdims=True)
            mean_y = sy * inv_n
            # torch.std default: unbiased (ddof=1); clamp guards f32 cancellation -> NaN
            var_y = (sy2 - float(n_valid) * mean_y * mean_y) * (1.0 / float(max(n_valid - 1, 1)))
            var_y = jnp.maximum(var_y, 1e-12)
            y = y * ((1.0 / math.sqrt(out_features)) * lax.rsqrt(var_y))

        y_ref[...] = y.astype(y_ref.dtype)

    return kernel


def _make_elementwise_kernel(method, bits):
    """Single streaming pass; global scalars precomputed outside (SMEM params)."""
    def kernel(params_ref, x_ref, y_ref):
        kw = {}
        if _uses_tanh(method, bits):
            kw['inv_max_tanh'] = params_ref[0]
            if method == 'Yu21':
                kw['mean_abs'] = params_ref[1]
        elif method in ('Yu21', 'Sun21') and bits == 1:
            kw['mean_abs'] = params_ref[0]
        elif method == 'LSQ':
            kw['sf'] = params_ref[0]
        y = _quantize_block(x_ref[...].astype(jnp.float32), method, bits, **kw)
        y_ref[...] = y.astype(y_ref.dtype)

    return kernel


def _make_sat_scale_kernel(method, bits, n_valid, tr, num_tiles, out_features):
    """2-phase streaming kernel for SAT-*W with scale=True (std of quantized y)."""
    inv_n = 1.0 / float(n_valid)
    inv_nm1 = 1.0 / float(max(n_valid - 1, 1))
    inv_sqrt_of = 1.0 / math.sqrt(out_features)
    valid_in_last = n_valid - (num_tiles - 1) * tr * LANES
    needs_mask = valid_in_last < tr * LANES

    def kernel(params_ref, x_ref, y_ref, sy_acc, sy2_acc):
        ph = pl.program_id(0)
        i = pl.program_id(1)
        y = _quantize_block(x_ref[...].astype(jnp.float32), method, bits,
                            inv_max_tanh=params_ref[0])

        @pl.when(jnp.logical_and(ph == 0, i == 0))
        def _():
            sy_acc[...] = jnp.zeros_like(sy_acc)
            sy2_acc[...] = jnp.zeros_like(sy2_acc)

        @pl.when(ph == 0)
        def _():
            def _accumulate(yv):
                # (8,128) vreg-shaped accumulators, updated elementwise (pure VPU)
                y3 = yv.reshape(tr // 8, 8, LANES)
                sy_acc[...] = sy_acc[...] + jnp.sum(y3, axis=0)
                sy2_acc[...] = sy2_acc[...] + jnp.sum(y3 * y3, axis=0)

            if needs_mask:
                @pl.when(i == num_tiles - 1)          # only the ragged tile is masked
                def _():
                    fid = (lax.broadcasted_iota(jnp.int32, (tr, LANES), 0) * LANES
                           + lax.broadcasted_iota(jnp.int32, (tr, LANES), 1))
                    _accumulate(jnp.where(fid < valid_in_last, y, 0.0))

                if num_tiles > 1:
                    @pl.when(i != num_tiles - 1)
                    def _():
                        _accumulate(y)
            else:
                _accumulate(y)

        @pl.when(ph == 1)
        def _():
            sy = jnp.sum(sy_acc[...], axis=(0, 1), keepdims=True)
            sy2 = jnp.sum(sy2_acc[...], axis=(0, 1), keepdims=True)
            mean_y = sy * inv_n
            var_y = (sy2 - float(n_valid) * mean_y * mean_y) * inv_nm1
            var_y = jnp.maximum(var_y, 1e-12)         # NaN guard (f32 cancellation)
            y_ref[...] = (y * (inv_sqrt_of * lax.rsqrt(var_y))).astype(y_ref.dtype)

    return kernel


# ----------------------------------------------------------------------------
# pallas_call wrappers
# ----------------------------------------------------------------------------
def _run_fast(xp, params, method, bits, n_valid, scale, out_features):
    rows = xp.shape[0]
    kernel = _make_fast_kernel(method, bits, n_valid, rows, scale, out_features)
    return pl.pallas_call(
        kernel,
        out_shape=jax.ShapeDtypeStruct(xp.shape, xp.dtype),
        in_specs=[pl.BlockSpec(memory_space=pltpu.MemorySpace.SMEM),
                  pl.BlockSpec(memory_space=pltpu.MemorySpace.VMEM)],
        out_specs=pl.BlockSpec(memory_space=pltpu.MemorySpace.VMEM),
        compiler_params=pltpu.CompilerParams(vmem_limit_bytes=FAST_VMEM_LIMIT),
    )(params, xp)


def _run_tiled(xp, params, method, bits, n_valid, tr, num_tiles, scale, out_features):
    if scale and method in _TANH_METHODS:
        kernel = _make_sat_scale_kernel(method, bits, n_valid, tr, num_tiles,
                                        out_features)
        grid = (2, num_tiles)
        in_specs = [pl.BlockSpec(memory_space=pltpu.MemorySpace.SMEM),
                    pl.BlockSpec((tr, LANES), lambda ph, i: (i, 0))]
        # Park the output on block 0 during phase 0 -> y streamed out exactly once.
        out_specs = pl.BlockSpec((tr, LANES),
                                 lambda ph, i: (jnp.where(ph == 1, i, 0), 0))
        scratch = [pltpu.VMEM((8, LANES), jnp.float32),
                   pltpu.VMEM((8, LANES), jnp.float32)]
        dims = ("arbitrary", "arbitrary")
    else:
        kernel = _make_elementwise_kernel(method, bits)
        grid = (num_tiles,)
        in_specs = [pl.BlockSpec(memory_space=pltpu.MemorySpace.SMEM),
                    pl.BlockSpec((tr, LANES), lambda i: (i, 0))]
        out_specs = pl.BlockSpec((tr, LANES), lambda i: (i, 0))
        scratch = []
        dims = ("parallel",)        # no cross-tile state -> megacore-shardable on v7x

    return pl.pallas_call(
        kernel,
        out_shape=jax.ShapeDtypeStruct(xp.shape, xp.dtype),
        grid=grid,
        in_specs=in_specs,
        out_specs=out_specs,
        scratch_shapes=scratch,
        compiler_params=pltpu.CompilerParams(
            dimension_semantics=dims, vmem_limit_bytes=TILED_VMEM_LIMIT),
    )(params, xp)


# ----------------------------------------------------------------------------
# the module
# ----------------------------------------------------------------------------
class WeightQuantizer:
    def __init__(self, method, bits, _force_tiled=False,
                 _max_tile_rows=MAX_TILE_ROWS, **kwargs):
        self.method = method
        self.bits = bits
        self.scale = False
        self.out_features = None
        self.scale_factor = None
        self.scale_factor_grad = None
        self.n = None
        self.p = None
        self._force_tiled = _force_tiled
        self._max_tile_rows = _max_tile_rows
        if self.bits is not None:
            if self.method in _TANH_METHODS:
                assert self.bits != 1
                self.scale = kwargs['scale']
                if self.scale:
                    self.out_features = kwargs['out_features']
            elif self.method == 'LSQ':
                assert self.bits != 1
                self.n = -1.0 * 2.0 ** (bits - 1.0)
                self.p = 2.0 ** (bits - 1.0) - 1.0
                w = kwargs['weight']
                self.scale_factor_grad = 1.0 / math.sqrt(w.size * self.p)
                # nn.Parameter init (host-side glue): 2 * mean(|w|) / sqrt(p)
                self.scale_factor = (2.0 * jnp.mean(jnp.abs(w.astype(jnp.float32)))
                                     / math.sqrt(self.p))

    def _params(self, flat):
        """Global scalars for the tiled path, computed once by XLA (dual-TC on v7x)."""
        if self.method == 'LSQ':
            p0 = jnp.asarray(self.scale_factor, jnp.float32)
            p1 = jnp.float32(0.0)
        elif self.method in ('Yu21', 'Sun21') and self.bits == 1:
            p0 = jnp.mean(jnp.abs(flat.astype(jnp.float32)))
            p1 = jnp.float32(0.0)
        else:
            ax = jnp.abs(flat.astype(jnp.float32))
            # tanh monotone & odd => 1 / max|tanh(x)| == 1 / tanh(max|x|)
            p0 = 1.0 / jnp.tanh(jnp.max(ax))
            p1 = jnp.mean(ax) if self.method == 'Yu21' else jnp.float32(0.0)
        return jnp.stack([jnp.asarray(p0, jnp.float32),
                          jnp.asarray(p1, jnp.float32)])

    def __call__(self, x):
        if self.bits is None:
            return x                                     # nn.Identity()

        orig_shape = x.shape
        orig_dtype = x.dtype
        flat = x.reshape(-1)
        n = flat.shape[0]
        rows_min, rows_tiled, tr, num_tiles = _layout(n, orig_dtype,
                                                      self._max_tile_rows)

        use_fast = (not self._force_tiled
                    and rows_min * LANES * 4 <= FAST_PATH_MAX_F32_BYTES)
        if use_fast:
            xp = _to_slab(flat, rows_min)
            if self.method == 'LSQ':
                params = jnp.stack([jnp.asarray(self.scale_factor, jnp.float32),
                                    jnp.float32(0.0)])
            else:
                params = jnp.zeros((2,), jnp.float32)    # stats computed in-kernel
            yp = _run_fast(xp, params, self.method, self.bits, n,
                           self.scale, self.out_features)
        else:
            xp = _to_slab(flat, rows_tiled)
            params = self._params(flat)
            yp = _run_tiled(xp, params, self.method, self.bits, n, tr, num_tiles,
                            self.scale, self.out_features)

        yf = yp.reshape(-1)
        if yf.shape[0] != n:                             # static; skip slice if pad == 0
            yf = yf[:n]
        y = yf.reshape(orig_shape)
        return y if y.dtype == orig_dtype else y.astype(orig_dtype)


# ----------------------------------------------------------------------------
# pure-JAX reference (forward semantics of the PyTorch module)
# ----------------------------------------------------------------------------
def ref_forward(x, method, bits, scale=False, out_features=None, lsq_sf=None):
    x = x.astype(jnp.float32)
    if bits is None:
        return x
    if method in ('SAT-originalW', 'SAT-modifiedW'):
        y = jnp.tanh(x) / jnp.max(jnp.abs(jnp.tanh(x)))
        y = (y + 1.0) / 2.0
        if method == 'SAT-originalW':
            ei = (1 << bits) - 1
            y = jnp.round(ei * y) / ei
        else:
            eh = 1 << bits
            y = jnp.minimum(jnp.floor(eh * y), eh - 1) / eh
        y = y * 2.0 - 1.0
        if scale:
            sf = (1.0 / out_features ** 0.5) / jnp.std(y, ddof=1)
            y = y * sf
        return y
    if method in ('Yu21', 'Sun21'):
        if bits == 1:
            sf = jnp.mean(jnp.abs(x))
            return jnp.sign(x / sf) * sf
        y = jnp.tanh(x) / jnp.max(jnp.abs(jnp.tanh(x)))
        y = (y + 1.0) / 2.0
        ei = (1 << bits) - 1
        y = jnp.round(ei * y) / ei
        y = y * 2.0 - 1.0
        if method == 'Yu21':
            y = y * jnp.mean(jnp.abs(x))
        return y
    if method == 'LSQ':
        n = -1.0 * 2.0 ** (bits - 1.0)
        p = 2.0 ** (bits - 1.0) - 1.0
        y = x / (lsq_sf + 1e-6)
        y = jnp.clip(y, n, p)
        y = jnp.round(y)
        return y * lsq_sf


def _check(name, got, want, lenient):
    got = np.asarray(got)
    want = np.asarray(want)
    assert got.shape == want.shape, name
    if lenient:
        # tanh may differ by a few ulps between the Pallas EUP and XLA, which
        # can flip a quantization bin on exact boundaries; allow a tiny
        # mismatch rate on tanh-based quantizers.
        scale = max(float(np.max(np.abs(want))), 1e-6)
        frac_bad = float(np.mean(np.abs(got - want) > 1e-3 * scale))
        assert frac_bad <= 0.02, f"{name}: {frac_bad * 100:.2f}% mismatched"
    else:
        np.testing.assert_allclose(got, want, rtol=1e-4, atol=1e-5, err_msg=name)


# ----------------------------------------------------------------------------
if __name__ == "__main__":
    key = jax.random.PRNGKey(0)
    k1, k2 = jax.random.split(key)
    # synthetic conv weights, PyTorch OIHW layout
    x1 = 0.5 * jax.random.normal(k1, (8, 4, 3, 3), dtype=jnp.float32)     # fast path
    x2 = 0.5 * jax.random.normal(k2, (32, 16, 3, 3), dtype=jnp.float32)   # tiled path

    cases_fast = [
        ("fast/SAT-originalW/4/scale",
         WeightQuantizer('SAT-originalW', 4, scale=True, out_features=8),
         dict(method='SAT-originalW', bits=4, scale=True, out_features=8), True),
        ("fast/SAT-modifiedW/4",
         WeightQuantizer('SAT-modifiedW', 4, scale=False),
         dict(method='SAT-modifiedW', bits=4), True),
        ("fast/Yu21/1", WeightQuantizer('Yu21', 1), dict(method='Yu21', bits=1), False),
        ("fast/Yu21/4", WeightQuantizer('Yu21', 4), dict(method='Yu21', bits=4), True),
        ("fast/Sun21/4", WeightQuantizer('Sun21', 4), dict(method='Sun21', bits=4), True),
        ("fast/LSQ/4", WeightQuantizer('LSQ', 4, weight=x1), dict(method='LSQ', bits=4), False),
        ("fast/identity", WeightQuantizer('LSQ', None), dict(method='LSQ', bits=None), False),
    ]

    tiled_kw = dict(_force_tiled=True, _max_tile_rows=16)    # force multi-tile at small shapes
    cases_tiled = [
        ("tiled/SAT-originalW/4/scale",
         WeightQuantizer('SAT-originalW', 4, scale=True, out_features=32, **tiled_kw),
         dict(method='SAT-originalW', bits=4, scale=True, out_features=32), True),
        ("tiled/SAT-modifiedW/4",
         WeightQuantizer('SAT-modifiedW', 4, scale=False, **tiled_kw),
         dict(method='SAT-modifiedW', bits=4), True),
        ("tiled/Yu21/4", WeightQuantizer('Yu21', 4, **tiled_kw),
         dict(method='Yu21', bits=4), True),
        ("tiled/Yu21/1", WeightQuantizer('Yu21', 1, **tiled_kw),
         dict(method='Yu21', bits=1), False),
        ("tiled/LSQ/4", WeightQuantizer('LSQ', 4, weight=x2, **tiled_kw),
         dict(method='LSQ', bits=4), False),
    ]

    for name, q, ref_kwargs, lenient in cases_fast + cases_tiled:
        xin = x1 if name.startswith("fast") else x2
        y = jax.block_until_ready(q(xin))
        if ref_kwargs.get('method') == 'LSQ' and ref_kwargs.get('bits') is not None:
            ref_kwargs = dict(ref_kwargs, lsq_sf=q.scale_factor)
        y_ref = jax.block_until_ready(ref_forward(xin, **ref_kwargs))
        _check(name, y, y_ref, lenient)

    print("KERNEL_OK")
</pallas_src>

<mosaic_0001>
module attributes {stable_mosaic.version = 11 : i64} {
  func.func @kernel(%arg0: memref<2xf32, #tpu.memory_space<smem>>, %arg1: memref<8x128xf32, #tpu.memory_space<vmem>>, %arg2: memref<8x128xf32, #tpu.memory_space<vmem>>) attributes {dimension_semantics = [], scalar_prefetch = 0 : i64, scratch_operands = 0 : i64, tpu.core_type = #tpu.core_type<tc>} {
    %c0 = arith.constant 0 : index
    %c0_0 = arith.constant 0 : index
    %0 = vector.load %arg1[%c0, %c0_0] : memref<8x128xf32, #tpu.memory_space<vmem>>, vector<8x128xf32>
    %1 = math.absf %0 : vector<8x128xf32>
    %2 = vector.shape_cast %1 : vector<8x128xf32> to vector<1x8x128xf32>
    %cst = arith.constant dense<0xFF800000> : vector<1xf32>
    %3 = vector.multi_reduction <maximumf>, %2, %cst [1, 2] : vector<1x8x128xf32> to vector<1xf32>
    %4 = vector.shape_cast %3 : vector<1xf32> to vector<1x1x1xf32>
    %5 = vector.extract %4[0, 0, 0] : f32 from vector<1x1x1xf32>
    %6 = vector.broadcast %5 : f32 to vector<1x1xf32>
    %7 = math.tanh %6 : vector<1x1xf32>
    %cst_1 = arith.constant 1.000000e+00 : f32
    %8 = vector.broadcast %cst_1 : f32 to vector<1x1xf32>
    %9 = arith.divf %8, %7 : vector<1x1xf32>
    %10 = math.tanh %0 : vector<8x128xf32>
    %11 = vector.broadcast %9 : vector<1x1xf32> to vector<8x128xf32>
    %12 = arith.mulf %10, %11 : vector<8x128xf32>
    %cst_2 = arith.constant 1.000000e+00 : f32
    %13 = vector.broadcast %cst_2 : f32 to vector<8x128xf32>
    %14 = arith.addf %12, %13 : vector<8x128xf32>
    %cst_3 = arith.constant 5.000000e-01 : f32
    %15 = vector.broadcast %cst_3 : f32 to vector<8x128xf32>
    %16 = arith.mulf %14, %15 : vector<8x128xf32>
    %cst_4 = arith.constant 1.500000e+01 : f32
    %17 = vector.broadcast %cst_4 : f32 to vector<8x128xf32>
    %18 = arith.mulf %17, %16 : vector<8x128xf32>
    %19 = math.roundeven %18 : vector<8x128xf32>
    %cst_5 = arith.constant 0.0666666701 : f32
    %20 = vector.broadcast %cst_5 : f32 to vector<8x128xf32>
    %21 = arith.mulf %19, %20 : vector<8x128xf32>
    %cst_6 = arith.constant 2.000000e+00 : f32
    %22 = vector.broadcast %cst_6 : f32 to vector<8x128xf32>
    %23 = arith.mulf %21, %22 : vector<8x128xf32>
    %cst_7 = arith.constant 1.000000e+00 : f32
    %24 = vector.broadcast %cst_7 : f32 to vector<8x128xf32>
    %25 = arith.subf %23, %24 : vector<8x128xf32>
    %26 = tpu.iota {dimensions = array<i32: 0>} : vector<8x128xi32>
    %c128_i32 = arith.constant 128 : i32
    %27 = vector.broadcast %c128_i32 : i32 to vector<8x128xi32>
    %28 = arith.muli %26, %27 : vector<8x128xi32>
    %29 = tpu.iota {dimensions = array<i32: 1>} : vector<8x128xi32>
    %30 = arith.addi %28, %29 : vector<8x128xi32>
    %c288_i32 = arith.constant 288 : i32
    %31 = vector.broadcast %c288_i32 : i32 to vector<8x128xi32>
    %32 = arith.cmpi slt, %30, %31 : vector<8x128xi32>
    %cst_8 = arith.constant 0.000000e+00 : f32
    %33 = vector.broadcast %cst_8 : f32 to vector<8x128xf32>
    %34 = arith.select %32, %25, %33 : vector<8x128xi1>, vector<8x128xf32>
    %35 = vector.shape_cast %34 : vector<8x128xf32> to vector<1x8x128xf32>
    %cst_9 = arith.constant dense<0.000000e+00> : vector<1xf32>
    %36 = vector.multi_reduction <add>, %35, %cst_9 [1, 2] : vector<1x8x128xf32> to vector<1xf32>
    %37 = vector.shape_cast %36 : vector<1xf32> to vector<1x1x1xf32>
    %38 = vector.extract %37[0, 0, 0] : f32 from vector<1x1x1xf32>
    %39 = vector.broadcast %38 : f32 to vector<1x1xf32>
    %40 = arith.mulf %34, %34 : vector<8x128xf32>
    %41 = vector.shape_cast %40 : vector<8x128xf32> to vector<1x8x128xf32>
    %cst_10 = arith.constant dense<0.000000e+00> : vector<1xf32>
    %42 = vector.multi_reduction <add>, %41, %cst_10 [1, 2] : vector<1x8x128xf32> to vector<1xf32>
    %43 = vector.shape_cast %42 : vector<1xf32> to vector<1x1x1xf32>
    %44 = vector.extract %43[0, 0, 0] : f32 from vector<1x1x1xf32>
    %45 = vector.broadcast %44 : f32 to vector<1x1xf32>
    %cst_11 = arith.constant 0.00347222225 : f32
    %46 = vector.broadcast %cst_11 : f32 to vector<1x1xf32>
    %47 = arith.mulf %39, %46 : vector<1x1xf32>
    %cst_12 = arith.constant 2.880000e+02 : f32
    %48 = vector.broadcast %cst_12 : f32 to vector<1x1xf32>
    %49 = arith.mulf %48, %47 : vector<1x1xf32>
    %50 = arith.mulf %49, %47 : vector<1x1xf32>
    %51 = arith.subf %45, %50 : vector<1x1xf32>
    %cst_13 = arith.constant 0.00348432059 : f32
    %52 = vector.broadcast %cst_13 : f32 to vector<1x1xf32>
    %53 = arith.mulf %51, %52 : vector<1x1xf32>
    %cst_14 = arith.constant 9.99999996E-13 : f32
    %54 = vector.broadcast %cst_14 : f32 to vector<1x1xf32>
    %55 = arith.maximumf %53, %54 : vector<1x1xf32>
    %56 = math.rsqrt %55 : vector<1x1xf32>
    %cst_15 = arith.constant 0.353553385 : f32
    %57 = vector.broadcast %cst_15 : f32 to vector<1x1xf32>
    %58 = arith.mulf %57, %56 : vector<1x1xf32>
    %59 = vector.broadcast %58 : vector<1x1xf32> to vector<8x128xf32>
    %60 = arith.mulf %25, %59 : vector<8x128xf32>
    %c0_16 = arith.constant 0 : index
    %c0_17 = arith.constant 0 : index
    %61 = vector.load %arg2[%c0_16, %c0_17] : memref<8x128xf32, #tpu.memory_space<vmem>>, vector<8x128xf32>
    tpu.vector_store %arg2[%c0_16, %c0_17], %60 {strides = array<i32>} : memref<8x128xf32, #tpu.memory_space<vmem>>, vector<8x128xf32>,
    return
  }
}

</mosaic_0001>

<bundles_post_ra>
// kernel: tpu_custom_call.1
= control target key start
LH: loop header
LB: loop body
LE: loop exit
PB: predicated region body
PF: predicated region fallthrough
CT: control target
= control target key end

     0   :  { %7 = vsyncpa [#allocation5], 0  ;;  %s261_s0 = inlined_call_operand.hbm [shape: f32[2], index: 0, kind: input, shape index: {}]   ;;  %s262_s1 = inlined_call_operand.hbm [shape: f32[8,128], index: 1, kind: input, shape index: {}]   ;;  %s263_s2 = inlined_call_operand.hbm [shape: f32[8,128], index: 2, kind: output, shape index: {}]  }
   0x1   :  { %8 = vsyncpa [#allocation3], 0 }
   0x2   :  { %9 = vsyncpa [#allocation4], 0  ;;  %s15_s11 = sshll.u32 %s261_s0, 4  ;;  %s24_s14 = sshll.u32 %s262_s1, 4  ;;  %s16_s11 = int_to_ptr.hbm [resolvable:$true] %s15_s11  ;;  %s25_s14 = int_to_ptr.hbm [resolvable:$true] %s24_s14 }
   0x3   :  { %s234_s15 = smov [#allocation2]   ;;  %s235_s16 = smov [#allocation6]  }
   0x4   :  { %18 = dma.hbm_to_smem %s16_s11, 16, %s234_s15, [#allocation5]  }
   0x5   :  { %s26_s17 = sshll.u32 %s235_s16, 4  ;;  %s27_s17 = int_to_ptr.vmem [resolvable:$true] %s26_s17 }
   0x6   :  { %29 = dma.hbm_to_vmem [thread:$0]  %s25_s14, 128, %s27_s17, [#allocation3]  }
   0x7   :  { %228 = dma.done.wait [#allocation5], 16  }
   0x8   :  { %229 = vsyncadd [#allocation5], 4294967280 }
   0x9   :  { %230 = dma.done.wait [#allocation3], 128  }
   0xa   :  { %231 = vsyncadd [#allocation3], 4294967168 }
   0xb   :  { %38 = sfence }
   0xc   :  { %v39_v0 = vld [vmem:[#allocation6] sm:$0xff]  ;;  %v76_v25 = vlaneseq  ;;  %s236_s19 = smov [#allocation7]   ;;  %s131_s23 = sshll.u32 %s263_s2, 4  ;;  %s132_s23 = int_to_ptr.hbm [resolvable:$true] %s131_s23 }
   0xd   :  { %v40_v1 = vand.u32 2147483647, %v39_v0  ;;  %s129_s20 = sshll.u32 %s236_s19, 4  ;;  %s130_s20 = int_to_ptr.vmem [resolvable:$true] %s129_s20 }
   0xe   :  { %v77_v28 = vshrl.u32 %v76_v25, 7  ;;  %v80_v34 = vand.u32 127, %v76_v25 }
   0xf   :  { %41 = vmax.xlane.f32.xlu0 %v40_v1 }
  0x10   :  { %v78_v33 = vmul.u32 128, %v77_v28 }
  0x12   :  { %v81_v37 = vadd.s32 %v80_v34, %v78_v33 }
  0x14   :  { %vm82_vm5 = vcmp.lt.s32.totalorder %v81_v37, 288 }
  0x82   :  { %v42_v2 = vpop.xlane.xlu0 %41 }
  0x83   :  { %v43_v3 = vrot.slane %v42_v2, 4 }
  0x85   :  { %v44_v4 = vmax.f32 %v42_v2, %v43_v3 }
  0x87   :  { %v45_v5 = vrot.slane %v44_v4, 2 }
  0x89   :  { %v46_v6 = vmax.f32 %v44_v4, %v45_v5 }
  0x8b   :  { %v47_v7 = vrot.slane %v46_v6, 1 }
  0x8d   :  { %v48_v8 = vmax.f32 %v46_v6, %v47_v7 }
  0x8f   :  { %143 = vpush %v48_v8 }
  0xc0   :  { %s144_s0 = spop %143 }
  0xc1   :  { %v50_v9 = vstv %s144_s0 }
  0xc2   :  { %160 = vtanh.f32 %v50_v9 }
  0xc8   :  { %v161_v10 = vpop.eup %160 }
  0xc9   :  { %162 = vrcp.f32 %v161_v10  ;;  %v63_v14 = vand.u32 2147483648, %v161_v10  ;;  %v61_v16 = vand.u32 2147483647, %v161_v10  ;;  %vm57_vm1 = vweird.f32 %v161_v10 }
  0xca   :  { %164 = vtanh.f32 %v39_v0 }
  0xcb   :  { %v64_v19 = vor.u32 1.1754944e-38, %v63_v14  ;;  %vm62_vm3 = vcmp.eq.f32.partialorder %v61_v16, 8.507059e+37 }
  0xcf   :  { %v163_v11 = vpop.eup %162 }
  0xd0   :  { %v53_v12 = vmul.f32 %v163_v11, %v161_v10  ;;  %vm58_vm0 = vweird.f32 %v163_v11  ;;  %v165_v18 = vpop.eup %164 }
  0xd1   :  { %vm59_vm2 = vmor %vm57_vm1, %vm58_vm0 }
  0xd2   :  { %v54_v13 = vsub.f32 1.0, %v53_v12 }
  0xd4   :  { %v55_v15 = vmul.f32 %v163_v11, %v54_v13 }
  0xd6   :  { %v56_v17 = vadd.f32 %v163_v11, %v55_v15 }
  0xd8   :  { %v60_v20 = vsel %vm59_vm2, %v163_v11, %v56_v17 }
  0xd9   :  { %v65_v21 = vsel %vm62_vm3, %v64_v19, %v60_v20 }
  0xda   :  { %v68_v22 = vmul.f32 %v165_v18, %v65_v21 }
  0xdc   :  { %v69_v23 = vadd.f32 1.0, %v68_v22 }
  0xde   :  { %v70_v24 = vmul.f32 0.5, %v69_v23 }
  0xe0   :  { %v71_v26 = vmul.f32 15.0, %v70_v24 }
  0xe2   :  { %v147_v27 = vcvt.f32.s32 %v71_v26  ;;  %v145_v30 = vand.u32 2147483647, %v71_v26  ;;  %v150_v32 = vand.u32 2147483648, %v71_v26 }
  0xe4   :  { %v148_v29 = vcvt.s32.f32 %v147_v27  ;;  %vm146_vm4 = vcmp.lt.f32.partialorder %v145_v30, 8388608.0 }
  0xe6   :  { %v149_v31 = vand.u32 2147483647, %v148_v29 }
  0xe8   :  { %v151_v35 = vor.u32 %v150_v32, %v149_v31 }
  0xea   :  { %v152_v36 = vsel %vm146_vm4, %v151_v35, %v71_v26 }
  0xeb   :  { %v73_v38 = vmul.f32 0.06666667, %v152_v36 }
  0xed   :  { %v74_v39 = vmul.f32 2.0, %v73_v38 }
  0xef   :  { %v142_v40 = vadd.f32 -1.0, %v74_v39 }
  0xf1   :  { %v83_v41 = vsel %vm82_vm5, %v142_v40, 0.0 }
  0xf2   :  { %84 = vadd.xlane.f32.xlu0 %v83_v41  ;;  %v94_v42 = vmul.f32 %v83_v41, %v83_v41 }
  0xf4   :  { %95 = vadd.xlane.f32.xlu1 %v94_v42 }
 0x165   :  { %v85_v43 = vpop.xlane.xlu0 %84 }
 0x166   :  { %v86_v44 = vrot.slane %v85_v43, 4 }
 0x167   :  { %v96_v45 = vpop.xlane.xlu1 %95 }
 0x168   :  { %v87_v46 = vadd.f32 %v86_v44, %v85_v43  ;;  %v97_v47 = vrot.slane %v96_v45, 4 }
 0x16a   :  { %v88_v48 = vrot.slane %v87_v46, 2  ;;  %v98_v49 = vadd.f32 %v97_v47, %v96_v45 }
 0x16c   :  { %v89_v50 = vadd.f32 %v88_v48, %v87_v46  ;;  %v99_v51 = vrot.slane %v98_v49, 2 }
 0x16e   :  { %v100_v52 = vadd.f32 %v99_v51, %v98_v49  ;;  %v90_v53 = vrot.slane %v89_v50, 1 }
 0x170   :  { %v91_v54 = vadd.f32 %v90_v53, %v89_v50  ;;  %v101_v55 = vrot.slane %v100_v52, 1 }
 0x172   :  { %153 = vpush %v91_v54  ;;  %v102_v56 = vadd.f32 %v101_v55, %v100_v52 }
 0x174   :  { %155 = vpush %v102_v56 }
 0x1a3   :  { %s154_s1 = spop %153 }
 0x1a4   :  { %v93_v57 = vstv %s154_s1 }
 0x1a5   :  { %v105_v58 = vmul.f32 0.0034722222, %v93_v57  ;;  %s156_s18 = spop %155 }
 0x1a6   :  { %v104_v61 = vstv %s156_s18 }
 0x1a7   :  { %v106_v59 = vmul.f32 288.0, %v105_v58 }
 0x1a9   :  { %v107_v60 = vmul.f32 %v106_v59, %v105_v58 }
 0x1ab   :  { %v108_v62 = vsub.f32 %v104_v61, %v107_v60 }
 0x1ad   :  { %v109_v63 = vmul.f32 0.0034843206, %v108_v62 }
 0x1af   :  { %v110_v0 = vmax.f32 %v109_v63, 1e-12 }
 0x1b1   :  { %166 = vrsqrt.f32 %v110_v0  ;;  %vm117_vm7 = vweird.f32 %v110_v0 }
 0x1b7   :  { %v167_v1 = vpop.eup %166 }
 0x1b8   :  { %v112_v2 = vmul.f32 %v167_v1, %v110_v0  ;;  %vm118_vm6 = vweird.f32 %v167_v1 }
 0x1b9   :  { %vm119_vm8 = vmor %vm117_vm7, %vm118_vm6 }
 0x1ba   :  { %v113_v3 = vmul.f32 %v167_v1, %v112_v2 }
 0x1bc   :  { %v114_v4 = vmul.f32 0.5, %v113_v3 }
 0x1be   :  { %v115_v5 = vsub.f32 1.5, %v114_v4 }
 0x1c0   :  { %v116_v6 = vmul.f32 %v167_v1, %v115_v5 }
 0x1c2   :  { %v120_v7 = vsel %vm119_vm8, %v167_v1, %v116_v6 }
 0x1c3   :  { %v121_v8 = vmul.f32 0.35355338, %v120_v7 }
 0x1c5   :  { %v122_v9 = vmul.f32 %v142_v40, %v121_v8 }
 0x1c7   :  { %123 = vst [vmem:[#allocation7] sm:$0xff] %v122_v9 }
 0x1c8   :  { %134 = dma.vmem_to_hbm [thread:$0]  %s130_s20, 128, %s132_s23, [#allocation4]  }
 0x1c9   :  { %232 = dma.done.wait [#allocation4], 128  }
 0x1ca   :  { %233 = vsyncadd [#allocation4], 4294967168 }
 0x1cb   :  { %139 = vsyncpa [#allocation3], 1 }
 0x1cc   :  { %140 = vsyncpa [#allocation4], 1 }
 0x1cd   :  { %141 = vsyncpa [#allocation5], 1 }

</bundles_post_ra>
